<compile_context>
chip_gen: v6e
topology: v6e:2x2x1
jax: 0.10.0
libtpu: 0.0.40
codegen_flags: <defaults>
</compile_context>

<pallas_src>
import jax
import jax.numpy as jnp
from jax.experimental import pallas as pl
from jax.experimental.pallas import tpu as pltpu

_INV_SQRT2 = 0.7071067811865476


def _gelu_exact(x):
    # PyTorch nn.GELU default (approximate='none') -> exact erf formulation.
    return 0.5 * x * (1.0 + jax.lax.erf(x * _INV_SQRT2))


def dino_head_kernel(
    x_ref,                      # [tn, in_dim]       bf16
    w1_ref, b1_ref,             # [in_dim, hidden]   bf16, [1, hidden] f32
    w2_ref, b2_ref,             # [hidden, hidden]   bf16, [1, hidden] f32
    w3_ref, b3_ref,             # [hidden, bneck]    bf16, [1, bneck]  f32
    v_ref,                      # [bneck, to]        bf16  (V1|V2 concatenated, raw)
    s_ref,                      # [1, to]            f32   (g/||V||_col, precomputed)
    o_ref,                      # [tn, to]           f32
    z_ref,                      # scratch [tn, bneck] bf16 (persists over out axis)
):
    # ---- MLP + F.normalize: compute once per batch tile (out-tile 0 only) ----
    @pl.when(pl.program_id(1) == 0)
    def _():
        h = jnp.dot(x_ref[...], w1_ref[...], preferred_element_type=jnp.float32)
        h = _gelu_exact(h + b1_ref[...])
        h = jnp.dot(h.astype(jnp.bfloat16), w2_ref[...],
                    preferred_element_type=jnp.float32)
        h = _gelu_exact(h + b2_ref[...])
        z = jnp.dot(h.astype(jnp.bfloat16), w3_ref[...],
                    preferred_element_type=jnp.float32) + b3_ref[...]
        # F.normalize(z, dim=-1, p=2, eps=1e-12):
        # rsqrt(max(sum_sq, eps^2)) == 1 / max(||z||, eps); rsqrt -> EUP slot.
        inv = jax.lax.rsqrt(jnp.maximum(jnp.sum(z * z, axis=-1, keepdims=True),
                                        1e-24))
        z_ref[...] = (z * inv).astype(z_ref.dtype)

    # ---- weight-normalized last layer, this out-tile ----
    # y @ (g*V/||V||) == (y @ V) * (g/||V||); the per-column scale is
    # precomputed once on the host side, so this step is one MXU dot + a
    # broadcast multiply on the f32 accumulator.
    y = jnp.dot(z_ref[...], v_ref[...], preferred_element_type=jnp.float32)
    o_ref[...] = (y * s_ref[...]).astype(o_ref.dtype)


def _vmem_estimate_bytes(tn, to, in_dim, hidden, bneck):
    resident = 2 * (in_dim * hidden + hidden * hidden + hidden * bneck)  # bf16 W
    resident += 4 * (hidden + hidden + bneck)                            # f32 biases
    # double-buffered streamed tiles: x (bf16), V (bf16), scale (f32), out (f32)
    streamed = 2 * (2 * tn * in_dim + 2 * bneck * to + 4 * to + 4 * tn * to)
    scratch = 2 * tn * bneck                                             # bf16 z
    return resident + streamed + scratch


def dino_head_forward(x, params, *, tile_n=256, tile_out=512):
    """x: [N, in_dim].  params: packed dict from prepare_params()."""
    n, in_dim = x.shape
    hidden = params["w1"].shape[1]
    bottleneck = params["w3"].shape[1]
    out_dim = params["v"].shape[1]

    tn = n if n <= tile_n else tile_n
    to = out_dim if out_dim <= tile_out else tile_out
    assert n % tn == 0, "batch must be divisible by the batch tile"
    assert out_dim % to == 0, "out_dim must be divisible by the out tile"
    if n > tn:
        assert tn % 8 == 0
    if out_dim > to:
        assert to % 128 == 0

    grid = (n // tn, out_dim // to)

    const = lambda i, j: (0, 0)          # resident weights / biases
    in_specs = [
        pl.BlockSpec((tn, in_dim), lambda i, j: (i, 0)),      # x
        pl.BlockSpec((in_dim, hidden), const),                # w1
        pl.BlockSpec((1, hidden), const),                     # b1
        pl.BlockSpec((hidden, hidden), const),                # w2
        pl.BlockSpec((1, hidden), const),                     # b2
        pl.BlockSpec((hidden, bottleneck), const),            # w3
        pl.BlockSpec((1, bottleneck), const),                 # b3
        pl.BlockSpec((bottleneck, to), lambda i, j: (0, j)),  # v     (streamed)
        pl.BlockSpec((1, to), lambda i, j: (0, j)),           # scale (streamed)
    ]
    out_spec = pl.BlockSpec((tn, to), lambda i, j: (i, j))    # lane-dense output

    # Raise the scoped-VMEM limit only when the resident weights + tiles need
    # it (production shapes); leave the compiler default for small problems.
    est = _vmem_estimate_bytes(tn, to, in_dim, hidden, bottleneck)
    vmem_limit = None
    if est > (24 << 20):
        vmem_limit = min(int(est * 1.25) + (2 << 20), 100 << 20)

    return pl.pallas_call(
        dino_head_kernel,
        out_shape=jax.ShapeDtypeStruct((n, out_dim), jnp.float32),
        grid=grid,
        in_specs=in_specs,
        out_specs=out_spec,
        scratch_shapes=[pltpu.VMEM((tn, bottleneck), jnp.bfloat16)],
        compiler_params=pltpu.CompilerParams(
            # batch axis -> both TCs on v7x; out axis reuses z scratch -> arbitrary.
            dimension_semantics=("parallel", "arbitrary"),
            vmem_limit_bytes=vmem_limit,
        ),
    )(
        x.astype(jnp.bfloat16),
        params["w1"], params["b1"],
        params["w2"], params["b2"],
        params["w3"], params["b3"],
        params["v"], params["scale"],
    )


def init_params(key, in_dim, hidden_dim, bottleneck_dim, out_dim):
    """Deterministic synthetic init mirroring the module's parameter shapes."""
    ks = jax.random.split(key, 8)
    out_half = out_dim // 2

    def trunc(k, shape, std=0.02):
        return (std * jax.random.truncated_normal(k, -2.0, 2.0, shape)).astype(jnp.float32)

    # Stored already transposed to [in, out]; biases as [1, out] for broadcast.
    return {
        "w1": trunc(ks[0], (in_dim, hidden_dim)),
        "b1": jnp.zeros((1, hidden_dim), jnp.float32),
        "w2": trunc(ks[1], (hidden_dim, hidden_dim)),
        "b2": jnp.zeros((1, hidden_dim), jnp.float32),
        "w3": trunc(ks[2], (hidden_dim, bottleneck_dim)),
        "b3": jnp.zeros((1, bottleneck_dim), jnp.float32),
        # weight_norm "v" params; "g" filled with 1 as in the module.
        "v1": (0.05 * jax.random.normal(ks[3], (bottleneck_dim, out_half))).astype(jnp.float32),
        "g1": jnp.ones((1, out_half), jnp.float32),
        "v2": (0.05 * jax.random.normal(ks[4], (bottleneck_dim, out_half))).astype(jnp.float32),
        "g2": jnp.ones((1, out_half), jnp.float32),
    }


def prepare_params(raw):
    """One-time layout plumbing: bf16 MXU operands, concat the two last layers,
    and precompute the weight-norm per-column scale g/||V||_col (f32)."""
    v = jnp.concatenate([raw["v1"], raw["v2"]], axis=1).astype(jnp.bfloat16)
    g = jnp.concatenate([raw["g1"], raw["g2"]], axis=1)
    v_f32 = v.astype(jnp.float32)
    scale = g * jax.lax.rsqrt(jnp.sum(v_f32 * v_f32, axis=0, keepdims=True))
    return {
        "w1": raw["w1"].astype(jnp.bfloat16),
        "b1": raw["b1"],
        "w2": raw["w2"].astype(jnp.bfloat16),
        "b2": raw["b2"],
        "w3": raw["w3"].astype(jnp.bfloat16),
        "b3": raw["b3"],
        "v": v,          # raw bf16 V for the MXU
        "g": g,          # kept for the reference implementation
        "scale": scale,  # g / ||V||_col, applied to the f32 accumulator
    }


def reference_forward(x, packed):
    """f32 reference using the same bf16-rounded weights as the kernel."""
    w1 = packed["w1"].astype(jnp.float32)
    w2 = packed["w2"].astype(jnp.float32)
    w3 = packed["w3"].astype(jnp.float32)
    v = packed["v"].astype(jnp.float32)
    h = _gelu_exact(x @ w1 + packed["b1"])
    h = _gelu_exact(h @ w2 + packed["b2"])
    z = h @ w3 + packed["b3"]
    z = z / jnp.maximum(jnp.linalg.norm(z, axis=-1, keepdims=True), 1e-12)
    w_eff = packed["g"] * v / jnp.linalg.norm(v, axis=0, keepdims=True)
    return z @ w_eff


if __name__ == "__main__":
    # Small shapes consistent with the module, sized so the (batch, out) grid
    # and the z-scratch caching path are actually exercised (grid = (2, 4)).
    N, IN_DIM, HIDDEN, BOTTLENECK, OUT_DIM = 16, 32, 64, 32, 512

    key = jax.random.PRNGKey(0)
    kx, kp = jax.random.split(key)
    x = jax.random.normal(kx, (N, IN_DIM), dtype=jnp.float32)
    params = prepare_params(init_params(kp, IN_DIM, HIDDEN, BOTTLENECK, OUT_DIM))

    out = dino_head_forward(x, params, tile_n=8, tile_out=128)
    out = jax.block_until_ready(out)

    ref = reference_forward(x, params)
    assert out.shape == (N, OUT_DIM)
    # bf16 MXU operands with f32 accumulation -> relaxed tolerance vs f32 ref.
    assert jnp.allclose(out, ref, atol=2e-2, rtol=2e-2), "mismatch vs JAX reference"

    print("KERNEL_OK")
</pallas_src>

<mosaic_0001>
module attributes {stable_mosaic.version = 11 : i64} {
  func.func @dino_head_kernel(%arg0: i32, %arg1: i32, %arg2: memref<8x32xbf16, #tpu.memory_space<vmem>>, %arg3: memref<32x64xbf16, #tpu.memory_space<vmem>>, %arg4: memref<1x64xf32, #tpu.memory_space<vmem>>, %arg5: memref<64x64xbf16, #tpu.memory_space<vmem>>, %arg6: memref<1x64xf32, #tpu.memory_space<vmem>>, %arg7: memref<64x32xbf16, #tpu.memory_space<vmem>>, %arg8: memref<1x32xf32, #tpu.memory_space<vmem>>, %arg9: memref<32x128xbf16, #tpu.memory_space<vmem>>, %arg10: memref<1x128xf32, #tpu.memory_space<vmem>>, %arg11: memref<8x128xf32, #tpu.memory_space<vmem>>, %arg12: memref<8x32xbf16, #tpu.memory_space<vmem>>) attributes {dimension_semantics = [#tpu.dimension_semantics<parallel>, #tpu.dimension_semantics<arbitrary>], iteration_bounds = array<i64: 2, 4>, scalar_prefetch = 0 : i64, scratch_operands = 1 : i64, tpu.core_type = #tpu.core_type<tc>, window_params = [{transform_indices = @transform_0, window_bounds = array<i64: 8, 32>}, {pipeline_mode = #tpu.pipeline_mode<synchronous>, transform_indices = @transform_1, window_bounds = array<i64: 32, 64>}, {pipeline_mode = #tpu.pipeline_mode<synchronous>, transform_indices = @transform_2, window_bounds = array<i64: 1, 64>}, {pipeline_mode = #tpu.pipeline_mode<synchronous>, transform_indices = @transform_3, window_bounds = array<i64: 64, 64>}, {pipeline_mode = #tpu.pipeline_mode<synchronous>, transform_indices = @transform_4, window_bounds = array<i64: 1, 64>}, {pipeline_mode = #tpu.pipeline_mode<synchronous>, transform_indices = @transform_5, window_bounds = array<i64: 64, 32>}, {pipeline_mode = #tpu.pipeline_mode<synchronous>, transform_indices = @transform_6, window_bounds = array<i64: 1, 32>}, {transform_indices = @transform_7, window_bounds = array<i64: 32, 128>}, {transform_indices = @transform_8, window_bounds = array<i64: 1, 128>}, {transform_indices = @transform_9, window_bounds = array<i64: 8, 128>}]} {
    %c0_i32 = arith.constant 0 : i32
    %0 = arith.cmpi eq, %arg1, %c0_i32 : i32
    %1 = arith.extui %0 : i1 to i32
    %c0_i32_0 = arith.constant 0 : i32
    %2 = arith.cmpi ne, %1, %c0_i32_0 : i32
    scf.if %2 {
      %c0_8 = arith.constant 0 : index
      %c0_9 = arith.constant 0 : index
      %10 = vector.load %arg2[%c0_8, %c0_9] : memref<8x32xbf16, #tpu.memory_space<vmem>>, vector<8x32xbf16>
      %c0_10 = arith.constant 0 : index
      %c0_11 = arith.constant 0 : index
      %11 = vector.load %arg3[%c0_10, %c0_11] : memref<32x64xbf16, #tpu.memory_space<vmem>>, vector<32x64xbf16>
      %cst_12 = arith.constant dense<0.000000e+00> : vector<8x64xf32>
      %12 = tpu.matmul %10, %11, %cst_12 {dimension_numbers = #tpu.dot_dimension_numbers<[1], [0], [0], [1], [0, 0, 1, 1], [], []>} : vector<8x32xbf16>, vector<32x64xbf16>, vector<8x64xf32> -> vector<8x64xf32>
      %c0_13 = arith.constant 0 : index
      %c0_14 = arith.constant 0 : index
      %13 = vector.load %arg4[%c0_13, %c0_14] : memref<1x64xf32, #tpu.memory_space<vmem>>, vector<1x64xf32>
      %14 = vector.broadcast %13 : vector<1x64xf32> to vector<8x64xf32>
      %15 = arith.addf %12, %14 : vector<8x64xf32>
      %cst_15 = arith.constant 5.000000e-01 : f32
      %16 = vector.broadcast %cst_15 : f32 to vector<8x64xf32>
      %17 = arith.mulf %16, %15 : vector<8x64xf32>
      %cst_16 = arith.constant 0.707106769 : f32
      %18 = vector.broadcast %cst_16 : f32 to vector<8x64xf32>
      %19 = arith.mulf %15, %18 : vector<8x64xf32>
      %20 = math.erf %19 : vector<8x64xf32>
      %cst_17 = arith.constant 1.000000e+00 : f32
      %21 = vector.broadcast %cst_17 : f32 to vector<8x64xf32>
      %22 = arith.addf %21, %20 : vector<8x64xf32>
      %23 = arith.mulf %17, %22 : vector<8x64xf32>
      %24 = arith.truncf %23 : vector<8x64xf32> to vector<8x64xbf16>
      %c0_18 = arith.constant 0 : index
      %c0_19 = arith.constant 0 : index
      %25 = vector.load %arg5[%c0_18, %c0_19] : memref<64x64xbf16, #tpu.memory_space<vmem>>, vector<64x64xbf16>
      %cst_20 = arith.constant dense<0.000000e+00> : vector<8x64xf32>
      %26 = tpu.matmul %24, %25, %cst_20 {dimension_numbers = #tpu.dot_dimension_numbers<[1], [0], [0], [1], [0, 0, 1, 1], [], []>} : vector<8x64xbf16>, vector<64x64xbf16>, vector<8x64xf32> -> vector<8x64xf32>
      %c0_21 = arith.constant 0 : index
      %c0_22 = arith.constant 0 : index
      %27 = vector.load %arg6[%c0_21, %c0_22] : memref<1x64xf32, #tpu.memory_space<vmem>>, vector<1x64xf32>
      %28 = vector.broadcast %27 : vector<1x64xf32> to vector<8x64xf32>
      %29 = arith.addf %26, %28 : vector<8x64xf32>
      %cst_23 = arith.constant 5.000000e-01 : f32
      %30 = vector.broadcast %cst_23 : f32 to vector<8x64xf32>
      %31 = arith.mulf %30, %29 : vector<8x64xf32>
      %cst_24 = arith.constant 0.707106769 : f32
      %32 = vector.broadcast %cst_24 : f32 to vector<8x64xf32>
      %33 = arith.mulf %29, %32 : vector<8x64xf32>
      %34 = math.erf %33 : vector<8x64xf32>
      %cst_25 = arith.constant 1.000000e+00 : f32
      %35 = vector.broadcast %cst_25 : f32 to vector<8x64xf32>
      %36 = arith.addf %35, %34 : vector<8x64xf32>
      %37 = arith.mulf %31, %36 : vector<8x64xf32>
      %38 = arith.truncf %37 : vector<8x64xf32> to vector<8x64xbf16>
      %c0_26 = arith.constant 0 : index
      %c0_27 = arith.constant 0 : index
      %39 = vector.load %arg7[%c0_26, %c0_27] : memref<64x32xbf16, #tpu.memory_space<vmem>>, vector<64x32xbf16>
      %cst_28 = arith.constant dense<0.000000e+00> : vector<8x32xf32>
      %40 = tpu.matmul %38, %39, %cst_28 {dimension_numbers = #tpu.dot_dimension_numbers<[1], [0], [0], [1], [0, 0, 1, 1], [], []>} : vector<8x64xbf16>, vector<64x32xbf16>, vector<8x32xf32> -> vector<8x32xf32>
      %c0_29 = arith.constant 0 : index
      %c0_30 = arith.constant 0 : index
      %41 = vector.load %arg8[%c0_29, %c0_30] : memref<1x32xf32, #tpu.memory_space<vmem>>, vector<1x32xf32>
      %42 = vector.broadcast %41 : vector<1x32xf32> to vector<8x32xf32>
      %43 = arith.addf %40, %42 : vector<8x32xf32>
      %44 = arith.mulf %43, %43 : vector<8x32xf32>
      %cst_31 = arith.constant dense<0.000000e+00> : vector<8xf32>
      %45 = vector.multi_reduction <add>, %44, %cst_31 [1] : vector<8x32xf32> to vector<8xf32>
      %46 = vector.shape_cast %45 : vector<8xf32> to vector<8x1xf32>
      %cst_32 = arith.constant 1.000000e-24 : f32
      %47 = vector.broadcast %cst_32 : f32 to vector<8x1xf32>
      %48 = arith.maximumf %46, %47 : vector<8x1xf32>
      %49 = math.rsqrt %48 : vector<8x1xf32>
      %50 = vector.broadcast %49 : vector<8x1xf32> to vector<8x32xf32>
      %51 = arith.mulf %43, %50 : vector<8x32xf32>
      %52 = arith.truncf %51 : vector<8x32xf32> to vector<8x32xbf16>
      %c0_33 = arith.constant 0 : index
      %c0_34 = arith.constant 0 : index
      %53 = vector.load %arg12[%c0_33, %c0_34] : memref<8x32xbf16, #tpu.memory_space<vmem>>, vector<8x32xbf16>
      tpu.vector_store %arg12[%c0_33, %c0_34], %52 {strides = array<i32>} : memref<8x32xbf16, #tpu.memory_space<vmem>>, vector<8x32xbf16>,
    } else {
    }
    %c0 = arith.constant 0 : index
    %c0_1 = arith.constant 0 : index
    %3 = vector.load %arg12[%c0, %c0_1] : memref<8x32xbf16, #tpu.memory_space<vmem>>, vector<8x32xbf16>
    %c0_2 = arith.constant 0 : index
    %c0_3 = arith.constant 0 : index
    %4 = vector.load %arg9[%c0_2, %c0_3] : memref<32x128xbf16, #tpu.memory_space<vmem>>, vector<32x128xbf16>
    %cst = arith.constant dense<0.000000e+00> : vector<8x128xf32>
    %5 = tpu.matmul %3, %4, %cst {dimension_numbers = #tpu.dot_dimension_numbers<[1], [0], [0], [1], [0, 0, 1, 1], [], []>} : vector<8x32xbf16>, vector<32x128xbf16>, vector<8x128xf32> -> vector<8x128xf32>
    %c0_4 = arith.constant 0 : index
    %c0_5 = arith.constant 0 : index
    %6 = vector.load %arg10[%c0_4, %c0_5] : memref<1x128xf32, #tpu.memory_space<vmem>>, vector<1x128xf32>
    %7 = vector.broadcast %6 : vector<1x128xf32> to vector<8x128xf32>
    %8 = arith.mulf %5, %7 : vector<8x128xf32>
    %c0_6 = arith.constant 0 : index
    %c0_7 = arith.constant 0 : index
    %9 = vector.load %arg11[%c0_6, %c0_7] : memref<8x128xf32, #tpu.memory_space<vmem>>, vector<8x128xf32>
    tpu.vector_store %arg11[%c0_6, %c0_7], %8 {strides = array<i32>} : memref<8x128xf32, #tpu.memory_space<vmem>>, vector<8x128xf32>,
    return
  }
  func.func @transform_0(%arg0: i32, %arg1: i32) -> (i32, i32) {
    %c0_i32 = arith.constant 0 : i32
    %c0_i32_0 = arith.constant 0 : i32
    return %arg0, %c0_i32 : i32, i32
  }
  func.func @transform_1(%arg0: i32, %arg1: i32) -> (i32, i32) {
    %c0_i32 = arith.constant 0 : i32
    %c0_i32_0 = arith.constant 0 : i32
    %c0_i32_1 = arith.constant 0 : i32
    return %c0_i32, %c0_i32_0 : i32, i32
  }
  func.func @transform_2(%arg0: i32, %arg1: i32) -> (i32, i32) {
    %c0_i32 = arith.constant 0 : i32
    %c0_i32_0 = arith.constant 0 : i32
    %c0_i32_1 = arith.constant 0 : i32
    return %c0_i32, %c0_i32_0 : i32, i32
  }
  func.func @transform_3(%arg0: i32, %arg1: i32) -> (i32, i32) {
    %c0_i32 = arith.constant 0 : i32
    %c0_i32_0 = arith.constant 0 : i32
    %c0_i32_1 = arith.constant 0 : i32
    return %c0_i32, %c0_i32_0 : i32, i32
  }
  func.func @transform_4(%arg0: i32, %arg1: i32) -> (i32, i32) {
    %c0_i32 = arith.constant 0 : i32
    %c0_i32_0 = arith.constant 0 : i32
    %c0_i32_1 = arith.constant 0 : i32
    return %c0_i32, %c0_i32_0 : i32, i32
  }
  func.func @transform_5(%arg0: i32, %arg1: i32) -> (i32, i32) {
    %c0_i32 = arith.constant 0 : i32
    %c0_i32_0 = arith.constant 0 : i32
    %c0_i32_1 = arith.constant 0 : i32
    return %c0_i32, %c0_i32_0 : i32, i32
  }
  func.func @transform_6(%arg0: i32, %arg1: i32) -> (i32, i32) {
    %c0_i32 = arith.constant 0 : i32
    %c0_i32_0 = arith.constant 0 : i32
    %c0_i32_1 = arith.constant 0 : i32
    return %c0_i32, %c0_i32_0 : i32, i32
  }
  func.func @transform_7(%arg0: i32, %arg1: i32) -> (i32, i32) {
    %c0_i32 = arith.constant 0 : i32
    %c0_i32_0 = arith.constant 0 : i32
    return %c0_i32, %arg1 : i32, i32
  }
  func.func @transform_8(%arg0: i32, %arg1: i32) -> (i32, i32) {
    %c0_i32 = arith.constant 0 : i32
    %c0_i32_0 = arith.constant 0 : i32
    return %c0_i32, %arg1 : i32, i32
  }
  func.func @transform_9(%arg0: i32, %arg1: i32) -> (i32, i32) {
    %c0_i32 = arith.constant 0 : i32
    return %arg0, %arg1 : i32, i32
  }
}

</mosaic_0001>

<bundles_post_ra>
// kernel: tpu_custom_call.1
= control target key start
LH: loop header
LB: loop body
LE: loop exit
PB: predicated region body
PF: predicated region fallthrough
CT: control target
= control target key end

     0   :  { %s1752_s0 = inlined_call_operand.hbm [shape: bf16[16,32], index: 0, kind: input, shape index: {}]   ;;  %s1753_s1 = inlined_call_operand.vmem [shape: bf16[32,64], index: 1, kind: input, shape index: {}]   ;;  %s1754_s2 = inlined_call_operand.vmem [shape: f32[1,64], index: 2, kind: input, shape index: {}]   ;;  %s1755_s3 = inlined_call_operand.vmem [shape: bf16[64,64], index: 3, kind: input, shape index: {}]   ;;  %s1756_s4 = inlined_call_operand.vmem [shape: f32[1,64], index: 4, kind: input, shape index: {}]   ;;  %s1757_s5 = inlined_call_operand.vmem [shape: bf16[64,32], index: 5, kind: input, shape index: {}]   ;;  %s1758_s6 = inlined_call_operand.vmem [shape: f32[1,32], index: 6, kind: input, shape index: {}]   ;;  %s1759_s7 = inlined_call_operand.hbm [shape: bf16[32,512], index: 7, kind: input, shape index: {}]   ;;  %s1760_s8 = inlined_call_operand.vmem [shape: f32[1,512], index: 8, kind: input, shape index: {}]   ;;  %s1761_s9 = inlined_call_operand.hbm [shape: f32[16,512], index: 9, kind: output, shape index: {}]  }
   0x1   :  { %1774 = sst [smem:[#allocation22_spill]] %s1752_s0 }
   0x2   :  { %1775 = sst [smem:[#allocation23_spill]] %s1756_s4 }
   0x3   :  { %1776 = sst [smem:[#allocation24_spill]] %s1757_s5 }
   0x4   :  { %1777 = sst [smem:[#allocation25_spill]] %s1758_s6 }
   0x5   :  { %1778 = sst [smem:[#allocation26_spill]] %s1761_s9 }
   0x6   :  { %14 = vsyncpa [#allocation4], 0 }
   0x7   :  { %16 = vsyncpa [#allocation4 + $0x1], 0 }
   0x8   :  { %17 = vsyncpa [#allocation7], 0 }
   0x9   :  { %19 = vsyncpa [#allocation7 + $0x1], 0 }
   0xa   :  { %20 = vsyncpa [#allocation5], 0 }
   0xb   :  { %22 = vsyncpa [#allocation5 + $0x1], 0  ;;  %s1392_s30 = smov 0   ;;  %s1394_s10 = smov 0  }
   0xc   :  { %s1396_s11 = smov 0   ;;  %s1398_s12 = smov 0  }
   0xd   :  { %s1400_s13 = smov 0   ;;  %s1402_s14 = smov 0  }
   0xe   :  { %s1404_s15 = smov 0   ;;  %s1406_s16 = smov 0  }
   0xf   :  { %s1408_s17 = smov 0   ;;  %s1410_s18 = smov 0  }
  0x10   :  { %s1412_s19 = smov 0   ;;  %s1414_s20 = smov 0  }
  0x11   :  { %s1416_s21 = smov 0   ;;  %s1418_s22 = smov 0  }
  0x12 LB: > { %1779 = sst [smem:[#allocation12_spill]] %s1278_s30  ;;  %s1763_s23 = sadd.s32 4294967295, %s1330_s22   ;;  %s1330_s22 = sphi %s1418_s22, %s28_s22   ;;  %s1326_s21 = sphi %s1416_s21, %s1821_s21   ;;  %s1322_s20 = sphi %s1414_s20, %s1830_s20   ;;  %s1318_s19 = sphi %s1412_s19, %s1819_s19   ;;  %s1314_s18 = sphi %s1410_s18, %s1829_s18   ;;  %s1310_s17 = sphi %s1408_s17, %s1818_s17   ;;  %s1306_s16 = sphi %s1406_s16, %s1828_s16   ;;  %s1302_s15 = sphi %s1404_s15, %s1827_s15   ;;  %s1298_s14 = sphi %s1402_s14, %s1826_s14   ;;  %s1294_s13 = sphi %s1400_s13, %s1825_s13   ;;  %s1290_s12 = sphi %s1398_s12, %s1824_s12   ;;  %s1286_s11 = sphi %s1396_s11, %s1815_s11   ;;  %s1282_s10 = sphi %s1394_s10, %s1823_s10   ;;  %s1278_s30 = sphi %s1392_s30, %s1822_s30  }
  0x13   : > { %1780 = sst [smem:[#allocation13_spill]] %s1286_s11  ;;  %s37_s25 = sadd.s32 1, %s1322_s20 }
  0x14   : > { %1781 = sst [smem:[#allocation14_spill]] %s1310_s17  ;;  %s40_s26 = sadd.s32 1, %s1326_s21 }
  0x15   : > { %1782 = sst [smem:[#allocation15_spill]] %s1318_s19  ;;  %p38_p0 = scmp.ge.s32.totalorder %s37_s25, 4 }
  0x16   : > { %1783 = sst [smem:[#allocation16_spill]] %s1326_s21  ;;  %s47_s27 = sadd.s32 1, %s1310_s17 }
  0x17   : > { %p54_p1 = scmp.ne.s32.totalorder %s1310_s17, %s1306_s16  ;;  %p55_p2 = scmp.eq.s32.totalorder %s1330_s22, 0 }
  0x18   : > { %s1832_s25 = smov (%p38_p0, %s37_s25), 0  ;;  %s1834_s26 = smov (!%p38_p0, %s40_s26), %s1326_s21 }
  0x19   : > { %1784 = sst [smem:[#allocation17_spill]] %s1832_s25  ;;  %p1473_p3 = por %p55_p2, %p54_p1 }
  0x1a   : > { %p60_p4 = scmp.ne.s32.totalorder %s1306_s16, %s1302_s15  ;;  %p42_p5 = scmp.ge.s32.totalorder %s1834_s26, 2 }
  0x1b   : > { %p1480_p6 = scmp.eq.s32.totalorder %s1763_s23, 0  ;;  %s196_s24 = ssub.s32 %s1322_s20, %s1832_s25 }
  0x1c   : > { %s199_s9 = sadd.s32 1, %s1298_s14  ;;  %s1836_s26 = smov (%p42_p5, %s1834_s26), 0 }
  0x1d   : > { %1787 = sst [smem:[#allocation18_spill]] %s1836_s26  ;;  %p1491_p7 = por %p1480_p6, %p60_p4 }
  0x1e   : > { %p197_p8 = scmp.eq.s32.totalorder %s196_s24, 0  ;;  %s44_s23 = ssub.s32 %s1326_s21, %s1836_s26 }
  0x1f   : > { %p206_p9 = scmp.ne.s32.totalorder %s1298_s14, %s1294_s13  ;;  %p45_p10 = scmp.eq.s32.totalorder %s44_s23, 0 }
  0x20   : > { %p212_p11 = scmp.ne.s32.totalorder %s1294_s13, %s1290_s12  ;;  %s250_s26 = sor.u32 %s196_s24, %s44_s23 }
  0x21   : > { %s1502_s25 = scalar_select %p197_p8, %s1298_s14, %s199_s9  }
  0x22   : > { %s1505_s19 = scalar_select %p45_p10, %s1310_s17, %s47_s27  }
  0x23   : > { %1789 = sst [smem:[#allocation19_spill]] %s1502_s25  ;;  %p1509_p12 = por %p206_p9, %p55_p2 }
  0x24   : > { %1790 = sst [smem:[#allocation20_spill]] %s1505_s19  ;;  %p1515_p13 = por %p212_p11, %p1480_p6 }
  0x25   : > { %s253_s5 = sadd.s32 1, %s1286_s11  ;;  %p251_p0 = scmp.eq.s32.totalorder %s250_s26, 0 }
  0x26   : > { %s1792_s4 = scalar_select %p1515_p13, 1, 0 }
  0x27   : > { %p263_p1 = scmp.ne.s32.totalorder %s1286_s11, %s1282_s10  ;;  %s1793_s9 = sadd.s32 4294967295, %s1330_s22  }
  0x28   : > { %p264_p4 = scmp.eq.s32.totalorder %s1793_s9, 7  ;;  %p269_p5 = scmp.ne.s32.totalorder %s1282_s10, %s1278_s30 }
  0x29   : > { %s1527_s12 = scalar_select %p251_p0, %s1286_s11, %s253_s5  }
  0x2a   : > { %p1529_p2 = por %p264_p4, %p263_p1  ;;  %s1796_s29 = sadd.s32 4294967294, %s1330_s22  }
  0x2b   : > { %1794 = sst [smem:[#allocation21_spill]] %s1527_s12  ;;  %p270_p6 = scmp.eq.s32.totalorder %s1796_s29, 7 }
  0x2c   : > { %s1795_s27 = scalar_select %p1529_p2, 1, 0 }
  0x2d   : > { %p987_p8 = scmp.lt.s32.totalorder %s1330_s22, 8  ;;  %p1536_p9 = por %p270_p6, %p269_p5 }
  0x2e   : > { %s308_s24 = sand.u32 1, %s1310_s17   ;;  %s881_s19 = sshll.u32 %s1326_s21, 6 }
  0x2f   : > { %s1797_s23 = scalar_select %p1536_p9, 1, 0 }
  0x30   : > { %s880_s26 = sshll.u32 %s308_s24, 2  ;;  %s1798_s0 = sld [smem:[#allocation22_spill]] }
  0x31   : > { %s312_s5 = scalar_lea.vmem [#allocation3], %s880_s26  ;;  %p1547_p10 = pnand %p987_p8, %p1473_p3 }
  0x32   : > { %s319_s12 = sshll.u32 %s312_s5, 4  ;;  %p1553_p11 = pnand %p987_p8, %p1509_p12  ;;  %s320_s12 = int_to_ptr.vmem [resolvable:$true] %s319_s12 }
  0x33   : > { %p884_p0 = scmp.ge.s32.totalorder %s1330_s22, 1  ;;  %p350_p1 = scmp.lt.s32.totalorder %s1330_s22, 9 }
  0x34   : > { %s309_s21 = scalar_lea.sflag [#allocation4], %s308_s24  ;;  %p1128_p4 = pneg %p1547_p10 }
  0x35   : > { %s1332_s25 = smov [#allocation3]  }
  0x36   : > { %s317_s30 = scalar_lea.hbm %s1798_s0, %s881_s19  ;;  %s1139_s19 = scalar_lea.vmem %s320_s12, 64 }
  0x37   : > { %p1140_p5 = scmp.ne.s32.totalorder %s320_s12, %s1139_s19  ;;  %s1144_s28 = sshll.u32 %s1332_s25, 4  ;;  %s1145_s28 = int_to_ptr.vmem [resolvable:$false] %s1144_s28 }
  0x38   : > { %s1146_s26 = scalar_lea.vmem %s1145_s28, 128  ;;  %p1147_p3 = scmp.lt.s32.totalorder %s320_s12, %s1145_s28 }
  0x39   : > { %p1142_p6 = pnand %p1140_p5, %p1128_p4  ;;  %p1148_p2 = scmp.lt.s32.totalorder %s1146_s26, %s1139_s19 }
  0x3b   : > { %p1143_p9 = pneg %p1142_p6  ;;  %p1149_p13 = por %p1148_p2, %p1147_p3 }
  0x3d   : > { %p1150_p12 = pnand %p1149_p13, %p1143_p9 }
  0x3f   : > { %1153 = shalt.err (!%p1150_p12)
}
  0x40   : > { %979 = dma.hbm_to_vmem [thread:$0]  (!%p1547_p10), %s317_s30, 64, %s320_s12, %s309_s21  }
  0x41   : > { %p1567_p8 = pnand %p884_p0, %p350_p1  ;;  %s326_s24 = sand.u32 1, %s1298_s14  }
  0x42   : > { %s883_s9 = sshll.u32 %s1322_s20, 6  ;;  %s882_s5 = sshll.u32 %s326_s24, 4 }
  0x43   : > { %s335_s28 = scalar_lea.hbm %s1759_s7, %s883_s9  ;;  %s330_s11 = scalar_lea.vmem [#allocation6], %s882_s5 }
  0x44   : > { %s336_s26 = sshll.u32 %s330_s11, 4  ;;  %s327_s0 = scalar_lea.sflag [#allocation7], %s326_s24  ;;  %s337_s26 = int_to_ptr.vmem [resolvable:$true] %s336_s26 }
  0x45   : > { %p1156_p13 = pneg %p1553_p11  ;;  %s1167_s30 = scalar_lea.vmem %s337_s26, 256 }
  0x46   : > { %p1168_p2 = scmp.ne.s32.totalorder %s337_s26, %s1167_s30  ;;  %s1333_s21 = smov [#allocation6]  }
  0x47   : > { %s1172_s12 = sshll.u32 %s1333_s21, 4  ;;  %s1173_s12 = int_to_ptr.vmem [resolvable:$false] %s1172_s12 }
  0x48   : > { %p1170_p9 = pnand %p1168_p2, %p1156_p13  ;;  %s1174_s17 = scalar_lea.vmem %s1173_s12, 512 }
  0x49   : > { %p1175_p0 = scmp.lt.s32.totalorder %s337_s26, %s1173_s12  ;;  %p1176_p1 = scmp.lt.s32.totalorder %s1174_s17, %s1167_s30 }
  0x4a   : > { %p1171_p10 = pneg %p1170_p9 }
  0x4b   : > { %p1177_p4 = por %p1176_p1, %p1175_p0 }
  0x4d   : > { %p1178_p5 = pnand %p1177_p4, %p1171_p10 }
  0x4f   : > { %1181 = shalt.err (!%p1178_p5)
}
  0x50   : > { %s1334_s9 = smov 256   ;;  %s1335_s5 = smov 64  }
  0x51   : > { %s1336_s19 = smov 4   ;;  %354 = sbr.rel (%p1567_p8) target bundleno = 1117 (0x45d), region = 56 }
  0x52   : > { %982 = dma.hbm_to_vmem [thread:$0]  (!%p1553_p11), %s335_s28, 256, %s337_s26, %s327_s0, %s1334_s9, %s1335_s5, %s1336_s19  }
  0x53   : > { %s356_s24 = sand.u32 (!%p1567_p8), 1, %s1306_s16  }
  0x54   : > { %s1583_s25 = sshll.u32 (!%p1567_p8), %s356_s24, 2  ;;  %s357_s11 = scalar_lea.sflag (!%p1567_p8), [#allocation4], %s356_s24 }
  0x55   : > { %s360_s17 = scalar_lea.vmem (!%p1567_p8), [#allocation3], %s1583_s25 }
  0x56   : > { %1265 = dma.done.wait (%p1491_p7), %s357_s11, 64  }
  0x57   : > { %1267 = vsyncadd (%p1491_p7), %s357_s11, 4294967232  ;;  %s365_s29 = sand.u32 1, %s1294_s13   ;;  %p1802_p11 = scmp.ne.s32.totalorder %s1792_s4, 0 }
  0x58   : > { %s1591_s0 = sshll.u32 %s365_s29, 4  ;;  %s366_s6 = scalar_lea.sflag [#allocation7], %s365_s29 }
  0x59   : > { %s369_s28 = scalar_lea.vmem [#allocation6], %s1591_s0 }
  0x5a   : > { %1269 = dma.done.wait (%p1802_p11), %s366_s6, 256  }
  0x5b   : > { %1271 = vsyncadd (%p1802_p11), %s366_s6, 4294967040  ;;  %s1773_s26 = sand.u32 1, %s1282_s10   ;;  %p412_p6 = scmp.lt.s32.totalorder %s1314_s18, 3 }
  0x5c   : > { %s1602_s15 = sshll.u32 %s1773_s26, 3  ;;  %p888_p7 = scmp.ne.s32.totalorder %s1314_s18, 0 }
  0x5d   : > { %s1605_s30 = scalar_select %p412_p6, %s1314_s18, 3 }
  0x5e   : > { %s411_s5 = scalar_lea.vmem [#allocation8], %s1602_s15  ;;  %419 = sbr.rel (%p888_p7) target bundleno = 899 (0x383), region = 68 }
  0x5f   : > { %s414_s9 = scalar_lea.vmem %s1760_s8, %s1605_s30  ;;  %s1803_s6 = sld [smem:[#allocation24_spill]] (!%p888_p7) }
  0x60   : > { %s1804_s29 = sld [smem:[#allocation23_spill]] (!%p888_p7) }
  0x61   : > { %s1805_s4 = sld [smem:[#allocation25_spill]] (!%p888_p7) }
  0x63   : > { %v1108_v0 = vld [vmem:[%s1753_s1 + $0x8] sm:$0xff]   ;;  %v1337_v1 = vmov 0.0   ;;  %v1109_v2 = vld [vmem:[%s1753_s1] sm:$0xff]   ;;  %vm1338_vm0 = vmmov 0   ;;  %vm444_vm1 = vcmask 261120   ;;  %v1110_v4 = vld [vmem:[%s1755_s3 + $0x18] sm:$0xff]  }
  0x64   : > { %930 = vmatprep.subr.bf16.mxu0 %v1337_v1  ;;  %938 = vmatprep.subr.bf16.mxu1 %v1337_v1  ;;  %v420_v3 = vld [vmem:[%s360_s17] sm:$0xf]  ;;  %v1111_v5 = vld [vmem:[%s1755_s3 + $0x10] sm:$0xff]   ;;  %v889_v8 = vld [vmem:[%s1754_s2] ss:$0 sm:$0xff]  ;;  %vm533_vm2 = vcmask 523264  }
  0x65   : > { %931 = vmatpush3.bf16.msra.mxu0 %v1108_v0  ;;  %934 = vmatprep.mubr.msk.bf16.mxu0 %vm1338_vm0, %v1337_v1  ;;  %v1112_v6 = vld [vmem:[%s1755_s3 + $0x8] sm:$0xff]   ;;  %v1113_v7 = vld [vmem:[%s1755_s3] sm:$0xff]   ;;  %v1114_v20 = vld [vmem:[%s1803_s6 + $0x18] sm:$0xff]   ;;  %vm673_vm3 = vcmask 257024  }
  0x66   : > { %932 = vmatprep.subr.bf16.mxu0 %v1337_v1  ;;  %946 = vmatprep.mubr.msk.bf16.mxu1 %vm1338_vm0, %v1337_v1  ;;  %v1115_v21 = vld [vmem:[%s1803_s6 + $0x10] sm:$0xff]   ;;  %v1116_v22 = vld [vmem:[%s1803_s6 + $0x8] sm:$0xff]   ;;  %v1117_v23 = vld [vmem:[%s1803_s6] sm:$0xff]  }
  0x67   : > { %939 = vmatpush3.bf16.msra.mxu1 %v1110_v4  ;;  %v893_v24 = vld [vmem:[%s1804_s29] ss:$0 sm:$0xff] }
  0x68   : > { %940 = vmatprep.subr.bf16.mxu1 %v1337_v1  ;;  %v899_v36 = vld [vmem:[%s1805_s4] ss:$0 sm:$0xff] }
  0x69   : > { %933 = vmatpush3.bf16.msra.mxu0 %v1109_v2 }
  0x6a   : > { %950 = vmatprep.subr.bf16.mxu0 %v1337_v1 }
  0x6b   : > { %941 = vmatpush3.bf16.msra.mxu1 %v1111_v5 }
  0x6c   : > { %935 = vmatmul.mubr.msk.bf16.vlgmr.msra.gmra.mxu0 %vm444_vm1, %v420_v3  ;;  %942 = vmatprep.subr.bf16.mxu1 %v1337_v1 }
  0x6d   : > { %958 = vmatprep.mubr.msk.bf16.mxu0 %vm1338_vm0, %v1337_v1  ;;  %951 = vmatpush3.bf16.msra.mxu0 %v1114_v20 }
  0x6e   : > { %952 = vmatprep.subr.bf16.mxu0 %v1337_v1 }
  0x6f   : > { %943 = vmatpush3.bf16.msra.mxu1 %v1112_v6 }
  0x70   : > { %944 = vmatprep.subr.bf16.mxu1 %v1337_v1 }
  0x71   : > { %953 = vmatpush3.bf16.msra.mxu0 %v1115_v21 }
  0x72   : > { %954 = vmatprep.subr.bf16.mxu0 %v1337_v1 }
  0x73   : > { %945 = vmatpush3.bf16.msra.mxu1 %v1113_v7 }
  0x75   : > { %955 = vmatpush3.bf16.msra.mxu0 %v1116_v22 }
  0x76   : > { %956 = vmatprep.subr.bf16.mxu0 %v1337_v1 }
  0x79   : > { %957 = vmatpush3.bf16.msra.mxu0 %v1117_v23 }
 0x12c   : > { %v482_v9 = vpop.f32.mrf.mxu0 }
 0x12d   : > { %v483_v10 = vadd.f32 %v889_v8, %v482_v9 }
 0x12e   : > { %v936_v11 = vpop.f32.mrf.mxu0 }
 0x12f   : > { %v489_v12 = vmul.f32 0.70710677, %v483_v10  ;;  %v488_v16 = vmul.f32 0.5, %v483_v10 }
 0x130   : > { %v485_v13 = vpop.f32.mrf.mxu0 }
 0x131   : > { %1118 = verf.f32 %v489_v12 }
 0x132   : > { %v937_v14 = vpop.f32.mrf.mxu0 }
 0x13e   : > { %v1119_v15 = vpop.eup %1118 }
 0x13f   : > { %v491_v17 = vadd.f32 1.0, %v1119_v15 }
 0x141   : > { %v492_v18 = vmul.f32 %v491_v17, %v488_v16 }
 0x143   : > { %v493_v19 = vpack.c.bf16 %v492_v18, %v492_v18 }
 0x145   : > { %947 = vmatmul.mubr.msk.bf16.vlgmr.msra.gmra.mxu1 %vm533_vm2, %v493_v19 }
 0x205   : > { %v571_v25 = vpop.f32.mrf.mxu1 }
 0x206   : > { %v572_v26 = vadd.f32 %v893_v24, %v571_v25 }
 0x207   : > { %v948_v27 = vpop.f32.mrf.mxu1 }
 0x208   : > { %v578_v28 = vmul.f32 0.70710677, %v572_v26  ;;  %v577_v32 = vmul.f32 0.5, %v572_v26 }
 0x209   : > { %v574_v29 = vpop.f32.mrf.mxu1 }
 0x20a   : > { %1120 = verf.f32 %v578_v28 }
 0x20b   : > { %v949_v30 = vpop.f32.mrf.mxu1 }
 0x217   : > { %v1121_v31 = vpop.eup %1120 }
 0x218   : > { %v580_v33 = vadd.f32 1.0, %v1121_v31 }
 0x21a   : > { %v581_v34 = vmul.f32 %v580_v33, %v577_v32 }
 0x21c   : > { %v582_v35 = vpack.c.bf16 %v581_v34, %v581_v34 }
 0x21e   : > { %959 = vmatmul.mubr.msk.bf16.vlgmr.msra.gmra.mxu0 %vm533_vm2, %v582_v35 }
 0x2de   : > { %v659_v37 = vpop.f32.mrf.mxu0 }
 0x2df   : > { %v660_v38 = vadd.f32 %v899_v36, %v659_v37 }
 0x2e0   : > { %v960_v39 = vpop.f32.mrf.mxu0 }
 0x2e1   : > { %v665_v40 = vmul.f32 %v660_v38, %v660_v38 }
 0x2e2   : > { %v662_v41 = vpop.f32.mrf.mxu0 }
 0x2e3   : > { %v666_v42 = vsel %vm444_vm1, %v665_v40, 0.0 }
 0x2e4   : > { %v961_v43 = vpop.f32.mrf.mxu0  ;;  %667 = vadd.xlane.f32.xlu0 %v666_v42 }
 0x36d   : > { %v668_v44 = vpop.xlane.xlu0 %667 }
 0x36e   : > { %v669_v45 = vmax.f32 %v668_v44, 1e-24 }
 0x370   : > { %1122 = vrsqrt.f32 %v669_v45 }
 0x37d   : > { %v1123_v46 = vpop.eup %1122 }
 0x37e   : > { %v671_v47 = vmul.f32 %v1123_v46, %v660_v38 }
 0x380   : > { %v672_v48 = vpack.c.bf16 %v671_v47, %v671_v47 }
 0x382   : > { %674 = vst.msk [vmem:[#allocation2] sm:$0xf] %vm673_vm3, %v672_v48 }
 0x383 PF: > { %s1806_s17 = sld [smem:[#allocation15_spill]]  ;;  %v1124_v49 = vld [vmem:[%s369_s28 + $0x8] sm:$0xff]   ;;  %v1339_v50 = vmov 0.0   ;;  %v1125_v51 = vld [vmem:[%s369_s28] sm:$0xff]   ;;  %vm1340_vm4 = vmmov 0   ;;  %vm692_vm5 = vcmask 261120  }
 0x384   : > { %962 = vmatprep.subr.bf16.mxu0 %v1339_v50  ;;  %966 = vmatprep.mubr.msk.bf16.mxu0 %vm1340_vm4, %v1339_v50  ;;  %v908_v53 = vld [vmem:[%s414_s9] ss:$0 sm:$0xff]  ;;  %s761_s0 = sshll.u32 %s411_s5, 4  ;;  %s1807_s12 = sld [smem:[#allocation26_spill]]  ;;  %s1674_s0 = int_to_ptr.vmem [resolvable:$true] %s761_s0 }
 0x385   : > { %963 = vmatpush3.bf16.msra.mxu0 %v1124_v49  ;;  %s1182_s9 = scalar_lea.vmem %s1674_s0, 128  ;;  %p1810_p12 = scmp.ne.s32.totalorder %s1795_s27, 0 }
 0x386   : > { %964 = vmatprep.subr.bf16.mxu0 %v1339_v50  ;;  %p1183_p3 = scmp.ne.s32.totalorder %s1674_s0, %s1182_s9 }
 0x388   : > { %p1184_p8 = pnand %p1183_p3, %p1810_p12 }
 0x389   : > { %965 = vmatpush3.bf16.msra.mxu0 %v1125_v51  ;;  %v675_v52 = vld [vmem:[#allocation2] sm:$0xf]  ;;  %s910_s19 = sshll.u32 %s1806_s17, 2  ;;  %s1341_s17 = smov [#allocation8]  }
 0x38a   : > { %s757_s24 = sadd.s32 %s1314_s18, %s910_s19  ;;  %s1808_s4 = smov %s1807_s12 }
 0x38b   : > { %s911_s29 = sshll.u32 %s757_s24, 7  ;;  %s1809_s18 = sand.u32 1, %s1282_s10  }
 0x38c   : > { %967 = vmatmul.mubr.msk.bf16.vlgmr.msra.gmra.mxu0 %vm692_vm5, %v675_v52  ;;  %s1672_s26 = scalar_lea.hbm %s1807_s12, %s911_s29  ;;  %s746_s30 = scalar_lea.sflag [#allocation5], %s1809_s18 }
 0x38d   : > { %p1185_p13 = pneg %p1184_p8  ;;  %s1186_s19 = sshll.u32 %s1341_s17, 4  ;;  %s1187_s19 = int_to_ptr.vmem [resolvable:$false] %s1186_s19 }
 0x38e   : > { %s1188_s24 = scalar_lea.vmem %s1187_s19, 256  ;;  %p1189_p2 = scmp.lt.s32.totalorder %s1674_s0, %s1187_s19 }
 0x38f   : > { %p1190_p9 = scmp.lt.s32.totalorder %s1188_s24, %s1182_s9 }
 0x391   : > { %p1191_p10 = por %p1190_p9, %p1189_p2 }
 0x393   : > { %p1192_p0 = pnand %p1191_p10, %p1185_p13 }
 0x44c   : > { %v730_v54 = vpop.f32.mrf.mxu0 }
 0x44d   : > { %v743_v55 = vmul.f32 %v908_v53, %v730_v54 }
 0x44e   : > { %v968_v56 = vpop.f32.mrf.mxu0 }
 0x44f   : > { %744 = vst [vmem:[%s411_s5] sm:$0xff] %v743_v55 }
 0x450   : > { %v733_v57 = vpop.f32.mrf.mxu0 }
 0x451   : > { %1195 = shalt.err (!%p1192_p0)
}
 0x452   : > { %s1196_s15 = scalar_lea.hbm %s1672_s26, 128  ;;  %s1200_s11 = scalar_lea.hbm %s1808_s4, 1024 }
 0x453   : > { %p1197_p1 = scmp.ne.s32.totalorder %s1672_s26, %s1196_s15  ;;  %p1201_p11 = scmp.lt.s32.totalorder %s1672_s26, %s1808_s4 }
 0x454   : > { %p1202_p6 = scmp.lt.s32.totalorder %s1200_s11, %s1196_s15 }
 0x455   : > { %p1198_p4 = pnand %p1197_p1, %p1810_p12 }
 0x456   : > { %p1203_p7 = por %p1202_p6, %p1201_p11 }
 0x457   : > { %p1199_p5 = pneg %p1198_p4 }
 0x459   : > { %p1204_p3 = pnand %p1203_p7, %p1199_p5 }
 0x45b   : > { %1207 = shalt.err (!%p1204_p3)
}
 0x45c   : > { %974 = dma.vmem_to_hbm [thread:$0]  (%p1810_p12), %s1674_s0, 128, %s1672_s26, %s746_s30   ;;  %v969_v58 = vpop.f32.mrf.mxu0 }
 0x45d PF: > { %s1811_s21 = sld [smem:[#allocation12_spill]]  ;;  %p988_p8 = scmp.ge.s32.totalorder %s1330_s22, 2 }
 0x45e   : > { %p1812_p13 = scmp.ne.s32.totalorder %s1797_s23, 0 }
 0x460   : > { %p984_p2 = pnand %p988_p8, %p1812_p13 }
 0x462   : > { %p985_p9 = pneg %p984_p2 }
 0x463   : > { %s773_s12 = sand.u32 1, %s1811_s21  }
 0x464   : > { %s774_s18 = scalar_lea.sflag [#allocation5], %s773_s12 }
 0x465   : > { %1273 = dma.done.wait (%p985_p9), %s774_s18, 128  }
 0x466   : > { %1275 = vsyncadd (%p985_p9), %s774_s18, 4294967168  ;;  %s28_s22 = sadd.s32 1, %s1330_s22   ;;  %s1814_s26 = sld [smem:[#allocation13_spill]] }
 0x467   : > { %p1705_p10 = scmp.ge.s32.totalorder %s28_s22, 10   ;;  %s1815_s11 = sld [smem:[#allocation21_spill]] }
 0x468   : > { %s1816_s0 = sld [smem:[#allocation19_spill]]  ;;  %s1822_s30 = smov %s1282_s10 }
 0x469   : > { %s1817_s9 = sld [smem:[#allocation14_spill]]  ;;  %s1824_s12 = smov %s1294_s13 }
 0x46a   : > { %s1818_s17 = sld [smem:[#allocation20_spill]]  ;;  %s1825_s13 = smov %s1298_s14 }
 0x46b   : > { %s1819_s19 = sld [smem:[#allocation16_spill]]  ;;  %s1827_s15 = smov %s1306_s16 }
 0x46c   : > { %s1820_s23 = sld [smem:[#allocation17_spill]]  ;;  %s1823_s10 = smov %s1814_s26 }
 0x46d   : > { %s1821_s21 = sld [smem:[#allocation18_spill]]  ;;  %s1829_s18 = smov %s1322_s20 }
 0x46e   : > { %s1826_s14 = smov %s1816_s0  ;;  %27 = sbr.rel (!%p1705_p10) target bundleno = 18 (0x12), region = 121 }
 0x46f   : > { %s1828_s16 = smov %s1817_s9 }
 0x472   : > { %s1830_s20 = smov %s1820_s23 }
 0x473   :  { %779 = vsyncpa [#allocation4], 1 }
 0x474   :  { %781 = vsyncpa [#allocation4 + $0x1], 1 }
 0x475   :  { %782 = vsyncpa [#allocation7], 1 }
 0x476   :  { %784 = vsyncpa [#allocation7 + $0x1], 1 }
 0x477   :  { %785 = vsyncpa [#allocation5], 1 }
 0x478   :  { %787 = vsyncpa [#allocation5 + $0x1], 1 }

</bundles_post_ra>
